<compile_context>
chip_gen: v7x
topology: tpu7x:2x2x1
jax: 0.10.0
libtpu: 0.0.40
codegen_flags: <defaults>
</compile_context>

<pallas_src>
import jax
import jax.numpy as jnp
from jax.experimental import pallas as pl
from jax.experimental.pallas import tpu as pltpu

_BN_EPS = 1e-5


# ---------------------------------------------------------------------------
# pltpu.roll rotation-direction probe
# ---------------------------------------------------------------------------
def probe_roll_convention():
    """Pin pltpu.roll's rotation direction empirically so the im2col below is
    correct regardless of JAX/libtpu version.
    Returns +1 if pltpu.roll(x, s, axis)[i] == x[(i - s) % n]  (jnp.roll convention),
    -1 if it rotates the opposite way."""
    def kernel(x_ref, o_ref):
        o_ref[...] = pltpu.roll(x_ref[...], 1, 1)

    x = jnp.tile(jax.lax.iota(jnp.float32, 128)[None, :], (8, 1))
    out = pl.pallas_call(
        kernel, out_shape=jax.ShapeDtypeStruct((8, 128), jnp.float32))(x)
    return 1 if int(out[0, 0]) == 127 else -1


def _tensorcores_per_device():
    """Best-effort count of TensorCores one pallas_call can use via a 'parallel'
    grid axis.  1 on v5e/v6e (single TC); 2 on v4/v5p megacore and v7x.
    Detection failure only affects performance, never correctness."""
    try:
        dev = jax.devices()[0]
    except Exception:
        return 1
    n = getattr(dev, "num_cores", None)
    if isinstance(n, int) and 1 <= n <= 8:
        return n
    kind = str(getattr(dev, "device_kind", "")).lower()
    if any(tag in kind for tag in ("v4", "v5p", "7")):
        return 2
    return 1


# ---------------------------------------------------------------------------
# Fused SeparateHead kernel
# ---------------------------------------------------------------------------
def _border_masks(H, W):
    """(9, H*W) f32 validity masks for the 9 taps of a 3x3 conv with padding=1."""
    yy, xx = jnp.meshgrid(jnp.arange(H), jnp.arange(W), indexing='ij')
    rows = []
    for ky in range(3):
        for kx in range(3):
            dy, dx = ky - 1, kx - 1
            valid = ((yy + dy >= 0) & (yy + dy < H) &
                     (xx + dx >= 0) & (xx + dx < W))
            rows.append(valid.reshape(-1))
    return jnp.stack(rows).astype(jnp.float32)


def _make_fused_kernel(H, W, Cin, head_couts, head_nhidden, roll_sign):
    NH = len(head_couts)
    NHC = NH * Cin
    any_hidden = any(n >= 1 for n in head_nhidden)

    def lane_shift(act, s):
        """act: (C, L).  z with z[:, p] = act[:, p + s] for every in-bounds conv
        tap position (wrapped lanes -- across image borders, across images packed
        on the lane axis, or around the array -- are zeroed by the caller's mask)."""
        if s == 0:
            return act
        n = act.shape[-1]
        amount = ((-s) if roll_sign == 1 else s) % n
        return pltpu.roll(act, amount, 1)

    def taps(act, mask_ref):
        """Yields (t, bf16 tap) for the 9 taps of a 3x3 / pad=1 conv over `act`.
        tap[c, y*W + x] = act[c, (y+dy)*W + (x+dx)] (zero outside the image)."""
        for ky in range(3):
            for kx in range(3):
                dy, dx = ky - 1, kx - 1
                t = ky * 3 + kx
                if dy == 0 and dx == 0:
                    tap = act                                   # center: always valid
                else:
                    tap = lane_shift(act, dy * W + dx) * mask_ref[t:t + 1, :]
                yield t, tap.astype(jnp.bfloat16)

    def kernel(*refs):
        # ---- unpack: x, masks, packed weights, output, scratch ----
        x_ref, mask_ref, w0_ref, b0_ref = refs[:4]
        idx = 4
        extra = []                                # per-head 2nd..nth hidden convs
        for h in range(NH):
            row = []
            for _ in range(1, head_nhidden[h]):
                row.append((refs[idx], refs[idx + 1]))
                idx += 2
            extra.append(row)
        wf_ref, bf_ref = refs[idx], refs[idx + 1]
        idx += 2
        out_ref = refs[idx]
        patch1, patch2, hid_ref = refs[idx + 1:idx + 4]

        x = x_ref[0]                              # (Cin, L) f32, lane-dense

        # Phase 1: im2col of the shared input ONCE (layout [tap, cin]) -> one
        # merged matmul for every head's first hidden conv (BN folded into w/b).
        if any_hidden:
            for t, tap in taps(x, mask_ref):
                patch1[t * Cin:(t + 1) * Cin, :] = tap
            y0 = jnp.dot(w0_ref[...], patch1[...],
                         preferred_element_type=jnp.float32)
            hid_ref[...] = jnp.maximum(y0 + b0_ref[...], 0.0)
        for h in range(NH):                       # heads with num_conv == 1
            if head_nhidden[h] == 0:
                hid_ref[h * Cin:(h + 1) * Cin, :] = x

        # Extra hidden layers (num_conv > 2): per head, consuming its own band.
        for h in range(NH):
            for (w_ref, b_ref) in extra[h]:
                act = hid_ref[h * Cin:(h + 1) * Cin, :]
                for t, tap in taps(act, mask_ref):
                    patch1[t * Cin:(t + 1) * Cin, :] = tap
                y = jnp.dot(w_ref[...], patch1[...],
                            preferred_element_type=jnp.float32)
                hid_ref[h * Cin:(h + 1) * Cin, :] = jnp.maximum(y + b_ref[...], 0.0)

        # Phase 2: im2col of ALL heads' hidden activations at once into the big
        # patch (layout [tap, head, cin]) -> ONE block-diagonal matmul producing
        # every head's final conv -> ONE lane-dense (sum_cout, L) store.
        hid = hid_ref[...]
        for t, tap in taps(hid, mask_ref):
            patch2[t * NHC:(t + 1) * NHC, :] = tap
        out = jnp.dot(wf_ref[...], patch2[...],
                      preferred_element_type=jnp.float32) + bf_ref[...]
        out_ref[0, :, :] = out.astype(out_ref.dtype)

    return kernel


def separate_head_forward(x_nchw, kernel_params, roll_sign, num_tc=1):
    """x_nchw: (B, Cin, H, W) -> dict name -> (B, Cout, H, W)  (matches .dense())."""
    B, Cin, H, W = x_nchw.shape
    HW = H * W
    head_names = kernel_params['head_names']
    head_couts = kernel_params['head_couts']
    head_nhidden = kernel_params['head_nhidden']
    sum_cout = kernel_params['sum_cout']
    flat = kernel_params['flat']
    NH = len(head_couts)

    # Grid / lane-flattening policy: split B across TensorCores first (v7x,
    # megacore), flatten whatever remains per core onto the lane axis (v5e/v6e
    # collapse to grid=(1,) with B*HW lanes).
    grid_n = num_tc if (num_tc > 1 and B % num_tc == 0) else 1
    G = B // grid_n
    L = G * HW

    # Per step: (Cin, G*HW) channel-major, images contiguous on the lane axis.
    x2d = (x_nchw.astype(jnp.float32).reshape(grid_n, G, Cin, HW)
           .transpose(0, 2, 1, 3).reshape(grid_n, Cin, L))
    masks = jnp.tile(_border_masks(H, W), (1, G))     # tiled PER IMAGE (not broadcast)

    kernel = _make_fused_kernel(H, W, Cin, head_couts, head_nhidden, roll_sign)

    in_specs = [
        pl.BlockSpec((1, Cin, L), lambda s: (s, 0, 0)),
        pl.BlockSpec((9, L), lambda s: (0, 0)),
    ]
    for a in flat:   # packed constant operands: full-array blocks, staged once
        in_specs.append(pl.BlockSpec(a.shape, lambda s: (0, 0)))
    out_specs = pl.BlockSpec((1, sum_cout, L), lambda s: (s, 0, 0))
    out_shape = jax.ShapeDtypeStruct((grid_n, sum_cout, L), jnp.float32)

    out = pl.pallas_call(
        kernel,
        out_shape=out_shape,
        grid_spec=pltpu.PrefetchScalarGridSpec(
            num_scalar_prefetch=0,
            grid=(grid_n,),
            in_specs=in_specs,
            out_specs=out_specs,
            scratch_shapes=[
                pltpu.VMEM((9 * Cin, L), jnp.bfloat16),       # phase-1 im2col patch
                pltpu.VMEM((9 * NH * Cin, L), jnp.bfloat16),  # phase-2 merged patch
                pltpu.VMEM((NH * Cin, L), jnp.float32),       # hidden activations
            ],
        ),
        compiler_params=pltpu.CompilerParams(
            dimension_semantics=("parallel",)),
    )(x2d, masks, *flat)

    # (grid_n, sum_cout, G*HW) -> (B, sum_cout, HW) -> per-head NCHW slices.
    out = (out.reshape(grid_n, sum_cout, G, HW).transpose(0, 2, 1, 3)
           .reshape(B, sum_cout, HW))
    ret, off = {}, 0
    for name, c in zip(head_names, head_couts):
        ret[name] = out[:, off:off + c, :].reshape(B, c, H, W)
        off += c
    return ret


# ---------------------------------------------------------------------------
# Parameter construction (deterministic, mirrors SeparateHead's structure/init)
# ---------------------------------------------------------------------------
def _kaiming_normal_conv3x3(key, cin, cout):
    # torch kaiming_normal_ default: fan_in mode, gain sqrt(2); fan_in = cin*3*3
    std = (2.0 / (cin * 9)) ** 0.5
    return jax.random.normal(key, (3, 3, cin, cout), jnp.float32) * std  # HWIO


def build_separate_head_params(key, input_channels, sep_head_dict, init_bias=-2.19):
    """Raw parameters (conv weights HWIO + explicit BN stats) per head."""
    # TODO(synk): hidden convs assume bias=False (use_bias default); if a real
    # checkpoint carries hidden-conv biases, fold them into the BN shift below.
    params = {}
    for name, cfg in sep_head_dict.items():
        cout, num_conv = cfg['out_channels'], cfg['num_conv']
        hidden = []
        for _ in range(num_conv - 1):
            key, wk = jax.random.split(key)
            w = _kaiming_normal_conv3x3(wk, input_channels, input_channels)
            gamma = jnp.ones((input_channels,), jnp.float32)
            beta = jnp.zeros((input_channels,), jnp.float32)
            mean = jnp.zeros((input_channels,), jnp.float32)
            var = jnp.ones((input_channels,), jnp.float32)
            hidden.append((w, gamma, beta, mean, var))
        key, wk = jax.random.split(key)
        wf = _kaiming_normal_conv3x3(wk, input_channels, cout)
        if 'hm' in name:
            bf = jnp.full((cout,), init_bias, jnp.float32)
        else:
            bf = jnp.zeros((cout,), jnp.float32)
        params[name] = {'hidden': hidden, 'final': (wf, bf)}
    return params


def prepare_kernel_params(raw_params, input_channels):
    """Fold BN into the hidden conv weights/bias and pack everything into the few
    stacked operands the fused kernel consumes:
      * W0 stack  (NH*Cin, 9*Cin)  bf16  -- all heads' first hidden conv, merged
      * b0 stack  (NH*Cin, 1)      f32
      * per-(head, layer>=1) extra hidden (Cin, 9*Cin) bf16 / (Cin, 1) f32 pairs
      * block-diagonal final W (sum_cout, 9*NH*Cin) bf16, columns laid out
        [tap, head, cin] to match the phase-2 patch
      * final bias stack (sum_cout, 1) f32
    """
    names = list(raw_params.keys())
    NH = len(names)
    Cin = input_channels

    head_couts, head_nhidden, extra, finals = [], [], [], []
    w0 = jnp.zeros((NH * Cin, 9 * Cin), jnp.float32)
    b0 = jnp.zeros((NH * Cin, 1), jnp.float32)

    for h, name in enumerate(names):
        p = raw_params[name]
        head_nhidden.append(len(p['hidden']))
        for li, (w, gamma, beta, mean, var) in enumerate(p['hidden']):
            scale = gamma / jnp.sqrt(var + _BN_EPS)               # (Cin,)
            shift = beta - mean * scale
            wt = (w.reshape(9 * Cin, Cin) * scale[None, :]).T     # (Cin, 9*Cin), BN folded
            bt = shift.reshape(Cin, 1)
            if li == 0:
                w0 = w0.at[h * Cin:(h + 1) * Cin, :].set(wt)
                b0 = b0.at[h * Cin:(h + 1) * Cin, :].set(bt)
            else:
                extra.append((jnp.asarray(wt, jnp.bfloat16),
                              jnp.asarray(bt, jnp.float32)))
        wf, bf = p['final']
        head_couts.append(wf.shape[3])
        finals.append((wf, bf))

    sum_cout = sum(head_couts)
    WF = jnp.zeros((sum_cout, 9 * NH * Cin), jnp.float32)
    BF = jnp.zeros((sum_cout, 1), jnp.float32)
    off = 0
    for h, (wf, bf) in enumerate(finals):
        cout = wf.shape[3]
        w3 = wf.reshape(9, Cin, cout)                             # [tap, ci, co]
        for t in range(9):
            col0 = (t * NH + h) * Cin
            WF = WF.at[off:off + cout, col0:col0 + Cin].set(w3[t].T)
        BF = BF.at[off:off + cout, 0].set(bf)
        off += cout

    flat = ([jnp.asarray(w0, jnp.bfloat16), b0]
            + [a for pair in extra for a in pair]
            + [jnp.asarray(WF, jnp.bfloat16), BF])
    return dict(head_names=names, head_couts=tuple(head_couts),
                head_nhidden=tuple(head_nhidden), sum_cout=sum_cout, flat=flat)


# ---------------------------------------------------------------------------
# Pure-XLA reference (lax.conv) for validation
# ---------------------------------------------------------------------------
def _conv3x3_ref(x_nchw, w_hwio, bias=None):
    w_oihw = jnp.transpose(w_hwio, (3, 2, 0, 1))
    out = jax.lax.conv_general_dilated(
        x_nchw, w_oihw, window_strides=(1, 1), padding=((1, 1), (1, 1)),
        dimension_numbers=('NCHW', 'OIHW', 'NCHW'),
        precision=jax.lax.Precision.HIGHEST)
    if bias is not None:
        out = out + bias.reshape(1, -1, 1, 1)
    return out


def reference_forward(x_nchw, raw_params):
    ret = {}
    for name, p in raw_params.items():
        h = x_nchw
        for (w, gamma, beta, mean, var) in p['hidden']:
            h = _conv3x3_ref(h, w)
            scale = gamma / jnp.sqrt(var + _BN_EPS)
            shift = beta - mean * scale
            h = h * scale.reshape(1, -1, 1, 1) + shift.reshape(1, -1, 1, 1)
            h = jnp.maximum(h, 0.0)
        wf, bf = p['final']
        ret[name] = _conv3x3_ref(h, wf, bf)
    return ret


if __name__ == "__main__":
    B, Cin, H, W = 2, 32, 16, 16
    sep_head_dict = {
        'hm':       {'out_channels': 2, 'num_conv': 2},
        'center':   {'out_channels': 2, 'num_conv': 2},
        'center_z': {'out_channels': 1, 'num_conv': 2},
        'dim':      {'out_channels': 3, 'num_conv': 2},
    }

    key = jax.random.PRNGKey(0)
    key, xk = jax.random.split(key)
    x = jax.random.normal(xk, (B, Cin, H, W), jnp.float32)

    raw_params = build_separate_head_params(key, Cin, sep_head_dict)
    kparams = prepare_kernel_params(raw_params, Cin)
    roll_sign = probe_roll_convention()          # run eagerly, outside any jit
    num_tc = _tensorcores_per_device()

    fwd = jax.jit(lambda xx: separate_head_forward(xx, kparams, roll_sign, num_tc))
    out = fwd(x)
    jax.block_until_ready(out)

    # Validate against XLA's f32 convolution.  The kernel feeds the MXU bf16
    # operands (f32 accumulation), which yields ~1e-2..3e-2 max abs deviation at
    # these magnitudes; any structural error (wrong tap / mask / weight layout /
    # head slicing) would be O(1), so 1e-1 still discriminates sharply.
    ref = reference_forward(x, raw_params)
    for name, cfg in sep_head_dict.items():
        o, r = out[name], ref[name]
        expected = (B, cfg['out_channels'], H, W)
        assert o.shape == expected, (name, o.shape, expected)
        err = float(jnp.max(jnp.abs(o - r)))
        assert err < 1e-1, (name, err)

    print("KERNEL_OK")
</pallas_src>

<mosaic_0001>
module attributes {stable_mosaic.version = 11 : i64} {
  func.func @kernel(%arg0: memref<8x128xf32, #tpu.memory_space<vmem>>, %arg1: memref<8x128xf32, #tpu.memory_space<vmem>>) attributes {dimension_semantics = [], scalar_prefetch = 0 : i64, scratch_operands = 0 : i64, tpu.core_type = #tpu.core_type<tc>} {
    %c0 = arith.constant 0 : index
    %c0_0 = arith.constant 0 : index
    %0 = vector.load %arg0[%c0, %c0_0] : memref<8x128xf32, #tpu.memory_space<vmem>>, vector<8x128xf32>
    %c1_i32 = arith.constant 1 : i32
    %1 = tpu.dynamic_rotate %0 by %c1_i32 dim 1 : vector<8x128xf32>, i32 -> vector<8x128xf32>
    %c0_1 = arith.constant 0 : index
    %c0_2 = arith.constant 0 : index
    %2 = vector.load %arg1[%c0_1, %c0_2] : memref<8x128xf32, #tpu.memory_space<vmem>>, vector<8x128xf32>
    tpu.vector_store %arg1[%c0_1, %c0_2], %1 {strides = array<i32>} : memref<8x128xf32, #tpu.memory_space<vmem>>, vector<8x128xf32>,
    return
  }
}

</mosaic_0001>

<bundles_post_ra>
// kernel: tpu_custom_call.1
= control target key start
LH: loop header
LB: loop body
LE: loop exit
PB: predicated region body
PF: predicated region fallthrough
CT: control target
= control target key end

     0   :  { %6 = vsyncpa [#allocation3], 0  ;;  %s128_s0 = inlined_call_operand.hbm [shape: f32[8,128], index: 0, kind: input, shape index: {}]   ;;  %s129_s1 = inlined_call_operand.hbm [shape: f32[8,128], index: 1, kind: output, shape index: {}]  }
   0x1   :  { %7 = vsyncpa [#allocation4], 0  ;;  %s91_s6 = smov [#allocation2]   ;;  %s43_s10 = scalar_lea.hbm %s128_s0, 128 }
   0x2   :  { %s14_s7 = sshll.u32 %s91_s6, 4  ;;  %p44_p0 = scmp.ne.s32.totalorder %s128_s0, %s43_s10  ;;  %s15_s7 = int_to_ptr.vmem [resolvable:$true] %s14_s7 }
   0x3   :  { %p47_p1 = scmp.lt.u32.totalorder %s43_s10, %s128_s0 }
   0x5   :  { %p49_p2 = pnand %p47_p1, %p44_p0 }
   0x7   :  { %52 = shalt.err (!%p49_p2)
}
   0x8   :  { %s53_s15 = scalar_lea.vmem %s15_s7, 128  ;;  %p58_p4 = scmp.lt.s32.totalorder %s15_s7, %s15_s7 }
   0x9   :  { %p54_p3 = scmp.ne.s32.totalorder %s15_s7, %s53_s15  ;;  %p59_p5 = scmp.lt.s32.totalorder %s53_s15, %s53_s15 }
   0xb   :  { %p60_p6 = por %p59_p5, %p58_p4 }
   0xd   :  { %p61_p7 = pnand %p60_p6, %p54_p3 }
   0xf   :  { %64 = shalt.err (!%p61_p7)
}
  0x10   :  { %17 = dma.hbm_to_vmem [thread:$0]  %s128_s0, 128, %s15_s7, [#allocation3]  }
  0x11   :  { %87 = dma.done.wait [#allocation3], 128  }
  0x12   :  { %88 = vsyncadd [#allocation3], 4294967168  ;;  %v21_v0 = vld [vmem:[#allocation2] sm:$0xff]  ;;  %s92_s18 = smov 1   ;;  %s93_s19 = smov [#allocation5]  }
  0x13   :  { %22 = vrot.lane.b32.xlu0 %v21_v0, %s92_s18  ;;  %s31_s20 = sshll.u32 %s93_s19, 4  ;;  %s32_s20 = int_to_ptr.vmem [resolvable:$true] %s31_s20 }
  0x14   :  { %s65_s21 = scalar_lea.vmem %s32_s20, 128  ;;  %p70_p9 = scmp.lt.s32.totalorder %s32_s20, %s32_s20 }
  0x15   :  { %p66_p8 = scmp.ne.s32.totalorder %s32_s20, %s65_s21  ;;  %p71_p10 = scmp.lt.s32.totalorder %s65_s21, %s65_s21 }
  0x17   :  { %p72_p11 = por %p71_p10, %p70_p9 }
  0x19   :  { %p73_p12 = pnand %p72_p11, %p66_p8 }
  0x85   :  { %v23_v1 = vpop.permute.xlu0 %22 }
  0x86   :  { %24 = vst [vmem:[#allocation5] sm:$0xff] %v23_v1 }
  0x87   :  { %76 = shalt.err (!%p73_p12)
}
  0x88   :  { %s77_s0 = scalar_lea.hbm %s129_s1, 128 }
  0x89   :  { %p78_p13 = scmp.ne.s32.totalorder %s129_s1, %s77_s0  ;;  %p81_p0 = scmp.lt.u32.totalorder %s77_s0, %s129_s1 }
  0x8b   :  { %p83_p1 = pnand %p81_p0, %p78_p13 }
  0x8d   :  { %86 = shalt.err (!%p83_p1)
}
  0x8e   :  { %34 = dma.vmem_to_hbm [thread:$0]  %s32_s20, 128, %s129_s1, [#allocation4]  }
  0x8f   :  { %89 = dma.done.wait [#allocation4], 128  }
  0x90   :  { %90 = vsyncadd [#allocation4], 4294967168 }
  0x91   :  { %38 = vsyncpa [#allocation3], 1 }
  0x92   :  { %39 = vsyncpa [#allocation4], 1 }

</bundles_post_ra>
